<compile_context>
chip_gen: v6e
topology: v6e:2x2x1
jax: 0.10.0
libtpu: 0.0.40
codegen_flags: <defaults>
</compile_context>

<pallas_src>
import functools

import jax
import jax.numpy as jnp
from jax.experimental import pallas as pl
from jax.experimental.pallas import tpu as pltpu


def _round_up(n, m):
    return ((n + m - 1) // m) * m


def _cdiv(a, b):
    return (a + b - 1) // b


def _kan_poly_kernel(x_ref, w_ref, b_ref, o_ref, *, degree, mxu_dtype):
    """One batch-tile of the KAN polynomial layer.

    x_ref : (tm, inputdim)               VMEM
    w_ref : (max(degree,1), inputdim, outdim)  VMEM (resident, constant index)
    b_ref : (1, outdim)                  VMEM (effective bias: bias + x^0 term)
    o_ref : (tm, outdim)                 VMEM
    """
    bias = b_ref[...].astype(jnp.float32)  # (1, outdim)

    if degree == 0:
        # Whole output is the (folded x^0 + bias) constant.
        o_ref[...] = jnp.broadcast_to(bias, o_ref.shape).astype(o_ref.dtype)
        return

    x = x_ref[...].astype(jnp.float32)  # (tm, inputdim)

    # Power chain in f32 (accuracy); cast each power to the MXU dtype only at
    # the matmul boundary. `degree` accumulated dots into one f32 accumulator
    # (avoids the lane-misaligned concat of inputdim-wide blocks).
    xp = x  # x^1
    acc = jnp.dot(xp.astype(mxu_dtype), w_ref[0],
                  preferred_element_type=jnp.float32)
    for j in range(1, degree):
        xp = xp * x  # x^(j+1)
        acc = acc + jnp.dot(xp.astype(mxu_dtype), w_ref[j],
                            preferred_element_type=jnp.float32)

    o_ref[...] = (acc + bias).astype(o_ref.dtype)


def prepare_kan_params(coeffs, bias=None, *, mxu_dtype=None):
    """Hoistable per-layer weight prep (call once if coeffs are static params).

    Returns (w, bias_eff, degree):
      w        : (max(degree,1), inputdim, outdim) — w[j-1, i, o] = coeffs[o, i, j]
      bias_eff : (1, outdim) f32 — bias + sum_i coeffs[o, i, 0]  (x^0 term folded,
                 added unconditionally exactly as the module's einsum does)
    """
    outdim, inputdim, deg_p1 = coeffs.shape
    degree = deg_p1 - 1

    bias_eff = jnp.sum(coeffs[:, :, 0].astype(jnp.float32), axis=1)  # (outdim,)
    if bias is not None:
        bias_eff = bias_eff + jnp.reshape(bias, (outdim,)).astype(jnp.float32)
    bias_eff = bias_eff.reshape(1, outdim)

    if degree > 0:
        w = jnp.transpose(coeffs[:, :, 1:], (2, 1, 0))  # (degree, inputdim, outdim)
    else:
        w = jnp.zeros((1, inputdim, outdim), dtype=coeffs.dtype)  # dummy, unused

    matmul_dtype = jnp.float32 if mxu_dtype is None else mxu_dtype
    w = w.astype(matmul_dtype)
    return w, bias_eff, degree


def kan_polynomial_apply(x, w, bias_eff, degree, *, tm=1024):
    """Apply the prepared KAN polynomial transform to x of shape (..., inputdim)."""
    wdeg, inputdim, outdim = w.shape
    orig_shape = x.shape
    assert orig_shape[-1] == inputdim
    x2d = x.reshape(-1, inputdim)
    B = x2d.shape[0]

    # --- Batch tiling: no host-side pad; ragged tail handled by Pallas. ---
    tm = max(8, min(int(tm), _round_up(B, 8)))
    if B > 2 * 256:
        # Aim for >= ~8 grid steps (keeps both v7x TCs fed via the parallel
        # axis) but never shrink tiles below 256 rows.
        tm = min(tm, max(256, _round_up(_cdiv(B, 8), 8)))
    tm = _round_up(tm, 8)
    grid = _cdiv(B, tm)

    kernel = functools.partial(_kan_poly_kernel, degree=degree, mxu_dtype=w.dtype)

    # Rough double-buffered VMEM footprint; only raise the scoped limit if the
    # resident weight / tiles approach the default (16 MiB v5e, 32 MiB v6e/v7x).
    x_bytes = tm * inputdim * x2d.dtype.itemsize
    o_bytes = tm * outdim * x.dtype.itemsize
    w_bytes = w.size * w.dtype.itemsize
    b_bytes = bias_eff.size * bias_eff.dtype.itemsize
    est_vmem = 2 * (x_bytes + o_bytes + w_bytes + b_bytes) + tm * outdim * 4
    compiler_kwargs = dict(dimension_semantics=("parallel",))
    if est_vmem > 14 * 1024 * 1024:
        compiler_kwargs["vmem_limit_bytes"] = min(
            int(est_vmem * 1.25), 60 * 1024 * 1024
        )

    out2d = pl.pallas_call(
        kernel,
        out_shape=jax.ShapeDtypeStruct((B, outdim), x.dtype),
        grid_spec=pltpu.PrefetchScalarGridSpec(
            num_scalar_prefetch=0,
            grid=(grid,),
            in_specs=[
                pl.BlockSpec((tm, inputdim), lambda i: (i, 0)),
                pl.BlockSpec((wdeg, inputdim, outdim), lambda i: (0, 0, 0)),
                pl.BlockSpec((1, outdim), lambda i: (0, 0)),
            ],
            out_specs=pl.BlockSpec((tm, outdim), lambda i: (i, 0)),
        ),
        compiler_params=pltpu.CompilerParams(**compiler_kwargs),
    )(x2d, w, bias_eff)

    return out2d.reshape(orig_shape[:-1] + (outdim,))


def kan_polynomial_forward(x, coeffs, bias=None, *, tm=1024, mxu_dtype=None):
    """Convenience wrapper: prep params + apply.

    x      : (..., inputdim)
    coeffs : (outdim, inputdim, degree+1)  -- same layout as the PyTorch Parameter
    bias   : (outdim,) / (1, outdim) or None
    mxu_dtype : optional dtype (e.g. jnp.bfloat16) for the matmul operands;
                power chain and accumulation stay f32.
    """
    w, bias_eff, degree = prepare_kan_params(coeffs, bias, mxu_dtype=mxu_dtype)
    return kan_polynomial_apply(x, w, bias_eff, degree, tm=tm)


def _reference(x, coeffs, bias):
    """Pure-JAX reference mirroring the PyTorch polynomial_transform + bias."""
    outdim, inputdim, deg_p1 = coeffs.shape
    xshp = x.shape
    x2d = x.reshape(-1, inputdim)
    powers = jnp.stack([x2d ** i for i in range(deg_p1)], axis=-1)  # (B, i, j)
    y = jnp.einsum("bij,oij->bo", powers, coeffs)
    if bias is not None:
        y = y + jnp.reshape(bias, (1, outdim))
    return y.reshape(xshp[:-1] + (outdim,))


if __name__ == "__main__":
    inputdim, outdim, degree = 32, 32, 3

    key = jax.random.PRNGKey(0)
    kx, kx2, kc, kb = jax.random.split(key, 4)

    # Parameter init matching __init__ (coeffs scale); bias made nonzero to
    # actually exercise the bias path.
    coeffs = (
        jax.random.normal(kc, (outdim, inputdim, degree + 1), dtype=jnp.float32)
        / (jnp.sqrt(float(inputdim)) * jnp.sqrt(float(degree + 1)))
    )
    bias = 0.1 * jax.random.normal(kb, (outdim,), dtype=jnp.float32)

    # Case 1: B = 8*16 = 128 nodes/messages, with bias, f32 MXU.
    x = jax.random.normal(kx, (8, 16, inputdim), dtype=jnp.float32)
    y = jax.block_until_ready(kan_polynomial_forward(x, coeffs, bias))
    y_ref = _reference(x, coeffs, bias)
    assert y.shape == (8, 16, outdim)
    assert jnp.allclose(y, y_ref, atol=1e-4, rtol=1e-4), "mismatch vs reference (case 1)"

    # Case 2: ragged batch (B = 3*7 = 21, exercises the masked boundary block), no bias.
    x2 = jax.random.normal(kx2, (3, 7, inputdim), dtype=jnp.float32)
    y2 = jax.block_until_ready(kan_polynomial_forward(x2, coeffs, None))
    y2_ref = _reference(x2, coeffs, None)
    assert y2.shape == (3, 7, outdim)
    assert jnp.allclose(y2, y2_ref, atol=1e-4, rtol=1e-4), "mismatch vs reference (case 2)"

    # Case 3: bf16 MXU operands (f32 power chain + f32 accumulation). Per-operand
    # bf16 rounding grows with degree/|x|, so a loose tolerance is expected.
    y3 = jax.block_until_ready(
        kan_polynomial_forward(x, coeffs, bias, mxu_dtype=jnp.bfloat16)
    )
    assert jnp.allclose(y3, y_ref, atol=1e-1, rtol=1e-1), "mismatch vs reference (case 3, bf16)"

    # Case 4: degree = 0 edge case (pure folded-constant output path).
    coeffs0 = coeffs[:, :, :1]
    y4 = jax.block_until_ready(kan_polynomial_forward(x, coeffs0, bias))
    y4_ref = _reference(x, coeffs0, bias)
    assert jnp.allclose(y4, y4_ref, atol=1e-4, rtol=1e-4), "mismatch vs reference (case 4)"

    print("KERNEL_OK")
</pallas_src>

<mosaic_0001>
module attributes {stable_mosaic.version = 11 : i64} {
  func.func @_kan_poly_kernel(%arg0: i32, %arg1: memref<128x32xf32, #tpu.memory_space<vmem>>, %arg2: memref<3x32x32xf32, #tpu.memory_space<vmem>>, %arg3: memref<1x32xf32, #tpu.memory_space<vmem>>, %arg4: memref<128x32xf32, #tpu.memory_space<vmem>>) attributes {dimension_semantics = [#tpu.dimension_semantics<parallel>], iteration_bounds = array<i64: 1>, scalar_prefetch = 0 : i64, scratch_operands = 0 : i64, tpu.core_type = #tpu.core_type<tc>, window_params = [{transform_indices = @transform_0, window_bounds = array<i64: 128, 32>}, {pipeline_mode = #tpu.pipeline_mode<synchronous>, transform_indices = @transform_1, window_bounds = array<i64: 3, 32, 32>}, {pipeline_mode = #tpu.pipeline_mode<synchronous>, transform_indices = @transform_2, window_bounds = array<i64: 1, 32>}, {transform_indices = @transform_3, window_bounds = array<i64: 128, 32>}]} {
    %c0 = arith.constant 0 : index
    %c0_0 = arith.constant 0 : index
    %0 = vector.load %arg3[%c0, %c0_0] : memref<1x32xf32, #tpu.memory_space<vmem>>, vector<1x32xf32>
    %c0_1 = arith.constant 0 : index
    %c0_2 = arith.constant 0 : index
    %1 = vector.load %arg1[%c0_1, %c0_2] : memref<128x32xf32, #tpu.memory_space<vmem>>, vector<128x32xf32>
    %c0_3 = arith.constant 0 : index
    %c0_4 = arith.constant 0 : index
    %c0_5 = arith.constant 0 : index
    %2 = vector.load %arg2[%c0_3, %c0_4, %c0_5] : memref<3x32x32xf32, #tpu.memory_space<vmem>>, vector<1x32x32xf32>
    %3 = vector.shape_cast %2 : vector<1x32x32xf32> to vector<32x32xf32>
    %cst = arith.constant dense<0.000000e+00> : vector<128x32xf32>
    %4 = tpu.matmul %1, %3, %cst {dimension_numbers = #tpu.dot_dimension_numbers<[1], [0], [0], [1], [0, 0, 1, 1], [], []>} : vector<128x32xf32>, vector<32x32xf32>, vector<128x32xf32> -> vector<128x32xf32>
    %5 = arith.mulf %1, %1 : vector<128x32xf32>
    %c1 = arith.constant 1 : index
    %c0_6 = arith.constant 0 : index
    %c0_7 = arith.constant 0 : index
    %6 = vector.load %arg2[%c1, %c0_6, %c0_7] : memref<3x32x32xf32, #tpu.memory_space<vmem>>, vector<1x32x32xf32>
    %7 = vector.shape_cast %6 : vector<1x32x32xf32> to vector<32x32xf32>
    %cst_8 = arith.constant dense<0.000000e+00> : vector<128x32xf32>
    %8 = tpu.matmul %5, %7, %cst_8 {dimension_numbers = #tpu.dot_dimension_numbers<[1], [0], [0], [1], [0, 0, 1, 1], [], []>} : vector<128x32xf32>, vector<32x32xf32>, vector<128x32xf32> -> vector<128x32xf32>
    %9 = arith.addf %4, %8 : vector<128x32xf32>
    %10 = arith.mulf %5, %1 : vector<128x32xf32>
    %c2 = arith.constant 2 : index
    %c0_9 = arith.constant 0 : index
    %c0_10 = arith.constant 0 : index
    %11 = vector.load %arg2[%c2, %c0_9, %c0_10] : memref<3x32x32xf32, #tpu.memory_space<vmem>>, vector<1x32x32xf32>
    %12 = vector.shape_cast %11 : vector<1x32x32xf32> to vector<32x32xf32>
    %cst_11 = arith.constant dense<0.000000e+00> : vector<128x32xf32>
    %13 = tpu.matmul %10, %12, %cst_11 {dimension_numbers = #tpu.dot_dimension_numbers<[1], [0], [0], [1], [0, 0, 1, 1], [], []>} : vector<128x32xf32>, vector<32x32xf32>, vector<128x32xf32> -> vector<128x32xf32>
    %14 = arith.addf %9, %13 : vector<128x32xf32>
    %15 = vector.broadcast %0 : vector<1x32xf32> to vector<128x32xf32>
    %16 = arith.addf %14, %15 : vector<128x32xf32>
    %c0_12 = arith.constant 0 : index
    %c0_13 = arith.constant 0 : index
    %17 = vector.load %arg4[%c0_12, %c0_13] : memref<128x32xf32, #tpu.memory_space<vmem>>, vector<128x32xf32>
    tpu.vector_store %arg4[%c0_12, %c0_13], %16 {strides = array<i32>} : memref<128x32xf32, #tpu.memory_space<vmem>>, vector<128x32xf32>,
    return
  }
  func.func @transform_0(%arg0: i32) -> (i32, i32) {
    %c0_i32 = arith.constant 0 : i32
    %c0_i32_0 = arith.constant 0 : i32
    return %arg0, %c0_i32 : i32, i32
  }
  func.func @transform_1(%arg0: i32) -> (i32, i32, i32) {
    %c0_i32 = arith.constant 0 : i32
    %c0_i32_0 = arith.constant 0 : i32
    %c0_i32_1 = arith.constant 0 : i32
    %c0_i32_2 = arith.constant 0 : i32
    return %c0_i32, %c0_i32_0, %c0_i32_1 : i32, i32, i32
  }
  func.func @transform_2(%arg0: i32) -> (i32, i32) {
    %c0_i32 = arith.constant 0 : i32
    %c0_i32_0 = arith.constant 0 : i32
    %c0_i32_1 = arith.constant 0 : i32
    return %c0_i32, %c0_i32_0 : i32, i32
  }
  func.func @transform_3(%arg0: i32) -> (i32, i32) {
    %c0_i32 = arith.constant 0 : i32
    %c0_i32_0 = arith.constant 0 : i32
    return %arg0, %c0_i32 : i32, i32
  }
}

</mosaic_0001>

<bundles_post_ra>
// kernel: tpu_custom_call.1
= control target key start
LH: loop header
LB: loop body
LE: loop exit
PB: predicated region body
PF: predicated region fallthrough
CT: control target
= control target key end

     0   :  { %vm56_vm0 = vcmask 261120   ;;  %s1307_s1 = inlined_call_operand.vmem [shape: f32[3,32,32], index: 1, kind: input, shape index: {}]   ;;  %s1308_s0 = inlined_call_operand.vmem [shape: f32[128,32], index: 0, kind: input, shape index: {}]   ;;  %s1309_s2 = inlined_call_operand.vmem [shape: f32[1,32], index: 2, kind: input, shape index: {}]   ;;  %s1310_s3 = inlined_call_operand.vmem [shape: f32[128,32], index: 3, kind: output, shape index: {}]  }
   0x1   :  { %v718_v0 = vld [vmem:[%s1307_s1 + $0x38] sm:$0xff]  ;;  %v717_v1 = vld [vmem:[%s1307_s1 + $0x30] sm:$0xff]  ;;  %v965_v2 = vld [vmem:[%s1308_s0 + $0x40] sm:$0xff] }
   0x2   :  { %928 = vmatprep.subr.mxu1 %v718_v0  ;;  %832 = vmatprep.subr.mxu0 %v718_v0  ;;  %v716_v3 = vld [vmem:[%s1307_s1 + $0x28] sm:$0xff]  ;;  %v973_v4 = vld [vmem:[%s1308_s0] sm:$0xff]  ;;  %v985_v7 = vmul.f32 %v965_v2, %v965_v2  ;;  %v999_v10 = vld [vmem:[%s1308_s0 + $0x50] sm:$0xff] }
   0x3   :  { %932 = vmatpush3.msra.mxu1 %v718_v0  ;;  %833 = vmatpush3.msra.mxu0 %v718_v0  ;;  %v978_v5 = vld [vmem:[%s1308_s0 + $0x48] sm:$0xff]  ;;  %v715_v6 = vld [vmem:[%s1307_s1 + $0x20] sm:$0xff]  ;;  %v994_v9 = vmul.f32 %v973_v4, %v973_v4  ;;  %v1008_v12 = vld [vmem:[%s1308_s0 + $0x10] sm:$0xff]  ;;  %v1024_v16 = vmul.f32 %v999_v10, %v999_v10 }
   0x4   :  { %929 = vmatprep.subr.mxu1 %v717_v1  ;;  %834 = vmatprep.subr.mxu0 %v717_v1  ;;  %v990_v8 = vld [vmem:[%s1308_s0 + $0x8] sm:$0xff]  ;;  %v1003_v11 = vmul.f32 %v978_v5, %v978_v5  ;;  %v34_v13 = vld [vmem:[%s1307_s1 + $0x18] sm:$0xff]  ;;  %v37_v19 = vmul.f32 %v1008_v12, %v1008_v12  ;;  %v1041_v20 = vld [vmem:[%s1308_s0 + $0x60] sm:$0xff]  ;;  %v451_v52 = vmul.f32 %v985_v7, %v965_v2 }
   0x5   :  { %933 = vmatpush3.msra.mxu1 %v717_v1  ;;  %835 = vmatpush3.msra.mxu0 %v717_v1  ;;  %v36_v14 = vmul.f32 %v990_v8, %v990_v8  ;;  %v1018_v15 = vld [vmem:[%s1308_s0 + $0x58] sm:$0xff]  ;;  %v1052_v22 = vld [vmem:[%s1308_s0 + $0x20] sm:$0xff]  ;;  %v33_v23 = vld [vmem:[%s1307_s1 + $0x10] sm:$0xff]  ;;  %v1069_v26 = vmul.f32 %v1041_v20, %v1041_v20  ;;  %v443_v43 = vmul.f32 %v994_v9, %v973_v4 }
   0x6   :  { %930 = vmatprep.subr.mxu1 %v716_v3  ;;  %836 = vmatprep.subr.mxu0 %v716_v3  ;;  %v1029_v17 = vld [vmem:[%s1308_s0 + $0x18] sm:$0xff]  ;;  %v1047_v21 = vmul.f32 %v1018_v15, %v1018_v15  ;;  %v1063_v25 = vld [vmem:[%s1308_s0 + $0x68] sm:$0xff]  ;;  %v753_v28 = vld [vmem:[%s1307_s1 + $0x50] sm:$0xff]  ;;  %v39_v29 = vmul.f32 %v1052_v22, %v1052_v22  ;;  %v445_v46 = vmul.f32 %v37_v19, %v1008_v12 }
   0x7   :  { %934 = vmatpush3.msra.mxu1 %v716_v3  ;;  %837 = vmatpush3.msra.mxu0 %v716_v3  ;;  %v754_v18 = vld [vmem:[%s1307_s1 + $0x58] sm:$0xff]  ;;  %v38_v24 = vmul.f32 %v1029_v17, %v1029_v17  ;;  %v20_v27 = vld [vmem:[%s1308_s0 + $0x28] sm:$0xff]  ;;  %v1083_v30 = vld [vmem:[%s1308_s0 + $0x70] sm:$0xff]  ;;  %v1089_v31 = vmul.f32 %v1063_v25, %v1063_v25  ;;  %v444_v45 = vmul.f32 %v36_v14, %v990_v8 }
   0x8   :  { %931 = vmatprep.subr.mxu1 %v715_v6  ;;  %838 = vmatprep.subr.mxu0 %v715_v6  ;;  %v21_v32 = vld [vmem:[%s1308_s0 + $0x30] sm:$0xff]  ;;  %v32_v33 = vld [vmem:[%s1307_s1 + $0x8] sm:$0xff]  ;;  %v40_v34 = vmul.f32 %v20_v27, %v20_v27  ;;  %v1101_v35 = vld [vmem:[%s1308_s0 + $0x78] sm:$0xff]  ;;  %v1107_v36 = vmul.f32 %v1083_v30, %v1083_v30  ;;  %v447_v48 = vmul.f32 %v39_v29, %v1052_v22 }
   0x9   :  { %935 = vmatpush3.msra.mxu1 %v715_v6  ;;  %852 = vmatprep.mubr.msk.f32.mxu1 %vm56_vm0, %v985_v7  ;;  %v22_v37 = vld [vmem:[%s1308_s0 + $0x38] sm:$0xff]  ;;  %v752_v38 = vld [vmem:[%s1307_s1 + $0x48] sm:$0xff]  ;;  %v41_v39 = vmul.f32 %v21_v32, %v21_v32  ;;  %v50_v40 = vmul.f32 %v1101_v35, %v1101_v35  ;;  %v31_v41 = vld [vmem:[%s1307_s1] sm:$0xff]  ;;  %v446_v47 = vmul.f32 %v38_v24, %v1029_v17 }
   0xa   :  { %839 = vmatpush3.msra.mxu0 %v715_v6  ;;  %840 = vmatprep.mubr.msk.f32.mxu0 %vm56_vm0, %v994_v9  ;;  %v42_v42 = vmul.f32 %v22_v37, %v22_v37  ;;  %v751_v44 = vld [vmem:[%s1307_s1 + $0x40] sm:$0xff]  ;;  %v448_v49 = vmul.f32 %v40_v34, %v20_v27  ;;  %v452_v53 = vmul.f32 %v1003_v11, %v978_v5 }
   0xb   :  { %853 = vmatmul.mubr.msk.f32.vlgmr.msra.gmra.mxu1 %vm56_vm0, %v1003_v11  ;;  %864 = vmatprep.subr.mxu1 %v34_v13  ;;  %v449_v50 = vmul.f32 %v41_v39, %v21_v32  ;;  %v453_v54 = vmul.f32 %v1024_v16, %v999_v10  ;;  %v454_v55 = vmul.f32 %v1047_v21, %v1018_v15 }
   0xc   :  { %841 = vmatmul.mubr.msk.f32.vlgmr.msra.gmra.mxu0 %vm56_vm0, %v36_v14  ;;  %865 = vmatpush3.msra.mxu1 %v34_v13  ;;  %v450_v51 = vmul.f32 %v42_v42, %v22_v37  ;;  %v455_v56 = vmul.f32 %v1069_v26, %v1041_v20  ;;  %v456_v57 = vmul.f32 %v1089_v31, %v1063_v25 }
   0xd   :  { %896 = vmatprep.subr.mxu0 %v754_v18  ;;  %855 = vmatprep.mubr.msk.f32.mxu1 %vm56_vm0, %v1024_v16  ;;  %v457_v58 = vmul.f32 %v1107_v36, %v1083_v30  ;;  %v458_v59 = vmul.f32 %v50_v40, %v1101_v35 }
   0xe   :  { %897 = vmatpush3.msra.mxu0 %v754_v18  ;;  %843 = vmatprep.mubr.msk.f32.mxu0 %vm56_vm0, %v37_v19 }
   0xf   :  { %856 = vmatmul.mubr.msk.f32.gmra.mxu1 %vm56_vm0, %v1047_v21  ;;  %866 = vmatprep.subr.mxu1 %v33_v23 }
  0x10   :  { %844 = vmatmul.mubr.msk.f32.gmra.mxu0 %vm56_vm0, %v38_v24  ;;  %867 = vmatpush3.msra.mxu1 %v33_v23 }
  0x11   :  { %898 = vmatprep.subr.mxu0 %v753_v28  ;;  %858 = vmatprep.mubr.msk.f32.mxu1 %vm56_vm0, %v1069_v26 }
  0x12   :  { %899 = vmatpush3.msra.mxu0 %v753_v28  ;;  %846 = vmatprep.mubr.msk.f32.mxu0 %vm56_vm0, %v39_v29 }
  0x13   :  { %859 = vmatmul.mubr.msk.f32.gmra.mxu1 %vm56_vm0, %v1089_v31  ;;  %868 = vmatprep.subr.mxu1 %v32_v33 }
  0x14   :  { %847 = vmatmul.mubr.msk.f32.gmra.mxu0 %vm56_vm0, %v40_v34  ;;  %869 = vmatpush3.msra.mxu1 %v32_v33 }
  0x15   :  { %900 = vmatprep.subr.mxu0 %v752_v38  ;;  %861 = vmatprep.mubr.msk.f32.mxu1 %vm56_vm0, %v1107_v36 }
  0x16   :  { %901 = vmatpush3.msra.mxu0 %v752_v38  ;;  %849 = vmatprep.mubr.msk.f32.mxu0 %vm56_vm0, %v41_v39 }
  0x17   :  { %862 = vmatmul.mubr.msk.f32.gmra.mxu1 %vm56_vm0, %v50_v40  ;;  %870 = vmatprep.subr.mxu1 %v31_v41 }
  0x18   :  { %850 = vmatmul.mubr.msk.f32.gmra.mxu0 %vm56_vm0, %v42_v42  ;;  %871 = vmatpush3.msra.mxu1 %v31_v41 }
  0x19   :  { %902 = vmatprep.subr.mxu0 %v751_v44  ;;  %872 = vmatprep.mubr.msk.f32.mxu1 %vm56_vm0, %v973_v4 }
  0x1a   :  { %903 = vmatpush3.msra.mxu0 %v751_v44  ;;  %904 = vmatprep.mubr.msk.f32.mxu0 %vm56_vm0, %v443_v43 }
  0x1b   :  { %873 = vmatmul.mubr.msk.f32.vlgmr.msra.gmra.mxu1 %vm56_vm0, %v990_v8 }
  0x1c   :  { %905 = vmatmul.mubr.msk.f32.vlgmr.msra.gmra.mxu0 %vm56_vm0, %v444_v45  ;;  %875 = vmatprep.mubr.msk.f32.mxu1 %vm56_vm0, %v1008_v12 }
  0x1d   :  { %907 = vmatprep.mubr.msk.f32.mxu0 %vm56_vm0, %v445_v46 }
  0x1f   :  { %876 = vmatmul.mubr.msk.f32.gmra.mxu1 %vm56_vm0, %v1029_v17 }
  0x20   :  { %908 = vmatmul.mubr.msk.f32.gmra.mxu0 %vm56_vm0, %v446_v47  ;;  %878 = vmatprep.mubr.msk.f32.mxu1 %vm56_vm0, %v1052_v22 }
  0x21   :  { %910 = vmatprep.mubr.msk.f32.mxu0 %vm56_vm0, %v447_v48 }
  0x23   :  { %879 = vmatmul.mubr.msk.f32.gmra.mxu1 %vm56_vm0, %v20_v27 }
  0x24   :  { %911 = vmatmul.mubr.msk.f32.gmra.mxu0 %vm56_vm0, %v448_v49  ;;  %881 = vmatprep.mubr.msk.f32.mxu1 %vm56_vm0, %v21_v32 }
  0x25   :  { %913 = vmatprep.mubr.msk.f32.mxu0 %vm56_vm0, %v449_v50 }
  0x27   :  { %882 = vmatmul.mubr.msk.f32.gmra.mxu1 %vm56_vm0, %v22_v37 }
  0x28   :  { %914 = vmatmul.mubr.msk.f32.gmra.mxu0 %vm56_vm0, %v450_v51  ;;  %884 = vmatprep.mubr.msk.f32.mxu1 %vm56_vm0, %v965_v2 }
  0x29   :  { %916 = vmatprep.mubr.msk.f32.mxu0 %vm56_vm0, %v451_v52 }
  0x2b   :  { %885 = vmatmul.mubr.msk.f32.gmra.mxu1 %vm56_vm0, %v978_v5 }
  0x2c   :  { %917 = vmatmul.mubr.msk.f32.gmra.mxu0 %vm56_vm0, %v452_v53  ;;  %887 = vmatprep.mubr.msk.f32.mxu1 %vm56_vm0, %v999_v10 }
  0x2d   :  { %919 = vmatprep.mubr.msk.f32.mxu0 %vm56_vm0, %v453_v54 }
  0x2f   :  { %888 = vmatmul.mubr.msk.f32.gmra.mxu1 %vm56_vm0, %v1018_v15  ;;  %v1217_v15 = vld [vmem:[%s1309_s2] ss:$0 sm:$0xff] }
  0x30   :  { %920 = vmatmul.mubr.msk.f32.gmra.mxu0 %vm56_vm0, %v454_v55  ;;  %890 = vmatprep.mubr.msk.f32.mxu1 %vm56_vm0, %v1041_v20 }
  0x31   :  { %922 = vmatprep.mubr.msk.f32.mxu0 %vm56_vm0, %v455_v56 }
  0x33   :  { %891 = vmatmul.mubr.msk.f32.gmra.mxu1 %vm56_vm0, %v1063_v25 }
  0x34   :  { %923 = vmatmul.mubr.msk.f32.gmra.mxu0 %vm56_vm0, %v456_v57  ;;  %893 = vmatprep.mubr.msk.f32.mxu1 %vm56_vm0, %v1083_v30 }
  0x35   :  { %925 = vmatprep.mubr.msk.f32.mxu0 %vm56_vm0, %v457_v58 }
  0x37   :  { %894 = vmatmul.mubr.msk.f32.gmra.mxu1 %vm56_vm0, %v1101_v35 }
  0x38   :  { %926 = vmatmul.mubr.msk.f32.gmra.mxu0 %vm56_vm0, %v458_v59 }
  0xcb   :  { %v1198_v60 = vpop.f32.mrf.mxu1 }
  0xcc   :  { %v842_v61 = vpop.f32.mrf.mxu0 }
  0xcd   :  { %v1200_v62 = vpop.f32.mrf.mxu1 }
  0xce   :  { %v171_v63 = vpop.f32.mrf.mxu0 }
  0xcf   :  { %v1202_v0 = vpop.f32.mrf.mxu1 }
  0xd0   :  { %v845_v1 = vpop.f32.mrf.mxu0 }
  0xd1   :  { %v1204_v2 = vpop.f32.mrf.mxu1 }
  0xd2   :  { %v181_v3 = vpop.f32.mrf.mxu0 }
  0xd3   :  { %v1206_v4 = vpop.f32.mrf.mxu1 }
  0xd4   :  { %v848_v5 = vpop.f32.mrf.mxu0 }
  0xd5   :  { %v1208_v6 = vpop.f32.mrf.mxu1 }
  0xd6   :  { %v191_v7 = vpop.f32.mrf.mxu0 }
  0xd7   :  { %v1210_v8 = vpop.f32.mrf.mxu1 }
  0xd8   :  { %v851_v9 = vpop.f32.mrf.mxu0 }
  0xd9   :  { %v1212_v10 = vpop.f32.mrf.mxu1 }
  0xda   :  { %v201_v11 = vpop.f32.mrf.mxu0 }
  0xdb   :  { %v874_v12 = vpop.f32.mrf.mxu1 }
  0xdc   :  { %v370_v13 = vadd.f32 %v874_v12, %v842_v61  ;;  %v906_v14 = vpop.f32.mrf.mxu0 }
  0xdd   :  { %v364_v16 = vpop.f32.mrf.mxu1 }
  0xde   :  { %v658_v17 = vadd.f32 %v906_v14, %v370_v13  ;;  %v365_v18 = vadd.f32 %v364_v16, %v171_v63  ;;  %v578_v19 = vpop.f32.mrf.mxu0 }
  0xdf   :  { %v877_v20 = vpop.f32.mrf.mxu1 }
  0xe0   :  { %v680_v21 = vadd.f32 %v1217_v15, %v658_v17  ;;  %v657_v22 = vadd.f32 %v578_v19, %v365_v18  ;;  %v380_v23 = vadd.f32 %v877_v20, %v845_v1  ;;  %v909_v24 = vpop.f32.mrf.mxu0 }
  0xe1   :  { %v374_v25 = vpop.f32.mrf.mxu1 }
  0xe2   :  { %696 = vst.msk [vmem:[%s1310_s3 + $0x8] sm:$0xff] %vm56_vm0, %v680_v21  ;;  %v679_v26 = vadd.f32 %v1217_v15, %v657_v22  ;;  %v660_v27 = vadd.f32 %v909_v24, %v380_v23  ;;  %v375_v28 = vadd.f32 %v374_v25, %v181_v3  ;;  %v588_v29 = vpop.f32.mrf.mxu0 }
  0xe3   :  { %v880_v30 = vpop.f32.mrf.mxu1 }
  0xe4   :  { %695 = vst.msk [vmem:[%s1310_s3] sm:$0xff] %vm56_vm0, %v679_v26  ;;  %v682_v31 = vadd.f32 %v1217_v15, %v660_v27  ;;  %v659_v32 = vadd.f32 %v588_v29, %v375_v28  ;;  %v390_v33 = vadd.f32 %v880_v30, %v848_v5  ;;  %v912_v34 = vpop.f32.mrf.mxu0 }
  0xe5   :  { %v384_v35 = vpop.f32.mrf.mxu1 }
  0xe6   :  { %698 = vst.msk [vmem:[%s1310_s3 + $0x18] sm:$0xff] %vm56_vm0, %v682_v31  ;;  %v681_v36 = vadd.f32 %v1217_v15, %v659_v32  ;;  %v662_v37 = vadd.f32 %v912_v34, %v390_v33  ;;  %v385_v38 = vadd.f32 %v384_v35, %v191_v7  ;;  %v598_v39 = vpop.f32.mrf.mxu0 }
  0xe7   :  { %v883_v40 = vpop.f32.mrf.mxu1 }
  0xe8   :  { %697 = vst.msk [vmem:[%s1310_s3 + $0x10] sm:$0xff] %vm56_vm0, %v681_v36  ;;  %v684_v41 = vadd.f32 %v1217_v15, %v662_v37  ;;  %v661_v42 = vadd.f32 %v598_v39, %v385_v38  ;;  %v400_v43 = vadd.f32 %v883_v40, %v851_v9  ;;  %v915_v44 = vpop.f32.mrf.mxu0 }
  0xe9   :  { %v394_v45 = vpop.f32.mrf.mxu1 }
  0xea   :  { %700 = vst.msk [vmem:[%s1310_s3 + $0x28] sm:$0xff] %vm56_vm0, %v684_v41  ;;  %v683_v46 = vadd.f32 %v1217_v15, %v661_v42  ;;  %v664_v47 = vadd.f32 %v915_v44, %v400_v43  ;;  %v395_v48 = vadd.f32 %v394_v45, %v201_v11  ;;  %v608_v49 = vpop.f32.mrf.mxu0 }
  0xeb   :  { %v886_v50 = vpop.f32.mrf.mxu1 }
  0xec   :  { %699 = vst.msk [vmem:[%s1310_s3 + $0x20] sm:$0xff] %vm56_vm0, %v683_v46  ;;  %v686_v51 = vadd.f32 %v1217_v15, %v664_v47  ;;  %v663_v52 = vadd.f32 %v608_v49, %v395_v48  ;;  %v410_v53 = vadd.f32 %v886_v50, %v1198_v60  ;;  %v918_v54 = vpop.f32.mrf.mxu0 }
  0xed   :  { %v404_v55 = vpop.f32.mrf.mxu1 }
  0xee   :  { %702 = vst.msk [vmem:[%s1310_s3 + $0x38] sm:$0xff] %vm56_vm0, %v686_v51  ;;  %v685_v56 = vadd.f32 %v1217_v15, %v663_v52  ;;  %v666_v57 = vadd.f32 %v918_v54, %v410_v53  ;;  %v405_v58 = vadd.f32 %v404_v55, %v1200_v62  ;;  %v618_v59 = vpop.f32.mrf.mxu0 }
  0xef   :  { %v889_v61 = vpop.f32.mrf.mxu1 }
  0xf0   :  { %701 = vst.msk [vmem:[%s1310_s3 + $0x30] sm:$0xff] %vm56_vm0, %v685_v56  ;;  %v688_v60 = vadd.f32 %v1217_v15, %v666_v57  ;;  %v665_v63 = vadd.f32 %v618_v59, %v405_v58  ;;  %v420_v1 = vadd.f32 %v889_v61, %v1202_v0  ;;  %v921_v3 = vpop.f32.mrf.mxu0 }
  0xf1   :  { %v414_v5 = vpop.f32.mrf.mxu1 }
  0xf2   :  { %704 = vst.msk [vmem:[%s1310_s3 + $0x48] sm:$0xff] %vm56_vm0, %v688_v60  ;;  %v687_v62 = vadd.f32 %v1217_v15, %v665_v63  ;;  %v668_v7 = vadd.f32 %v921_v3, %v420_v1  ;;  %v415_v9 = vadd.f32 %v414_v5, %v1204_v2  ;;  %v628_v11 = vpop.f32.mrf.mxu0 }
  0xf3   :  { %v892_v12 = vpop.f32.mrf.mxu1 }
  0xf4   :  { %703 = vst.msk [vmem:[%s1310_s3 + $0x40] sm:$0xff] %vm56_vm0, %v687_v62  ;;  %v690_v0 = vadd.f32 %v1217_v15, %v668_v7  ;;  %v667_v13 = vadd.f32 %v628_v11, %v415_v9  ;;  %v430_v14 = vadd.f32 %v892_v12, %v1206_v4  ;;  %v924_v16 = vpop.f32.mrf.mxu0 }
  0xf5   :  { %v424_v17 = vpop.f32.mrf.mxu1 }
  0xf6   :  { %706 = vst.msk [vmem:[%s1310_s3 + $0x58] sm:$0xff] %vm56_vm0, %v690_v0  ;;  %v689_v2 = vadd.f32 %v1217_v15, %v667_v13  ;;  %v670_v18 = vadd.f32 %v924_v16, %v430_v14  ;;  %v425_v19 = vadd.f32 %v424_v17, %v1208_v6  ;;  %v638_v20 = vpop.f32.mrf.mxu0 }
  0xf7   :  { %v895_v21 = vpop.f32.mrf.mxu1 }
  0xf8   :  { %705 = vst.msk [vmem:[%s1310_s3 + $0x50] sm:$0xff] %vm56_vm0, %v689_v2  ;;  %v692_v4 = vadd.f32 %v1217_v15, %v670_v18  ;;  %v669_v22 = vadd.f32 %v638_v20, %v425_v19  ;;  %v440_v23 = vadd.f32 %v895_v21, %v1210_v8  ;;  %v927_v24 = vpop.f32.mrf.mxu0 }
  0xf9   :  { %v434_v25 = vpop.f32.mrf.mxu1 }
  0xfa   :  { %708 = vst.msk [vmem:[%s1310_s3 + $0x68] sm:$0xff] %vm56_vm0, %v692_v4  ;;  %v691_v6 = vadd.f32 %v1217_v15, %v669_v22  ;;  %v672_v26 = vadd.f32 %v927_v24, %v440_v23  ;;  %v435_v27 = vadd.f32 %v434_v25, %v1212_v10  ;;  %v648_v28 = vpop.f32.mrf.mxu0 }
  0xfc   :  { %707 = vst.msk [vmem:[%s1310_s3 + $0x60] sm:$0xff] %vm56_vm0, %v691_v6  ;;  %v694_v8 = vadd.f32 %v1217_v15, %v672_v26  ;;  %v671_v29 = vadd.f32 %v648_v28, %v435_v27 }
  0xfe   :  { %710 = vst.msk [vmem:[%s1310_s3 + $0x78] sm:$0xff] %vm56_vm0, %v694_v8  ;;  %v693_v30 = vadd.f32 %v1217_v15, %v671_v29 }
 0x100   :  { %709 = vst.msk [vmem:[%s1310_s3 + $0x70] sm:$0xff] %vm56_vm0, %v693_v30 }

</bundles_post_ra>
